<compile_context>
chip_gen: v6e
topology: v6e:2x2x1
jax: 0.10.0
libtpu: 0.0.40
codegen_flags: <defaults>
</compile_context>

<pallas_src>
import jax
import jax.numpy as jnp
import numpy as np
from jax.experimental import pallas as pl
from jax.experimental.pallas import tpu as pltpu


def _make_resblock_kernel(H, W, Bt, stride, dot_dtype):
    """Kernel over one lane-tile of Bt whole images, (channels, Bt*H*W) layout."""
    HW = H * W
    Lt = Bt * HW
    Ho = (H - 1) // stride + 1
    Wo = (W - 1) // stride + 1

    def kernel(x_ref, s1_ref, t1_ref, w1_ref, b1_ref, mask_ref,
               w2_ref, b2_ref, w3_ref, b3_ref, o_ref, stk_ref):
        Cmid = w1_ref.shape[0]

        # ---- bn1 (eval-mode per-channel affine) + relu ---------------- VPU, f32
        x = x_ref[...]                                          # (Cin, Lt)
        h = jnp.maximum(x * s1_ref[...] + t1_ref[...], 0.0)

        # ---- conv1 (1x1) with bn2 folded into weights/bias, + relu ---- MXU
        h = jnp.dot(w1_ref[...], h.astype(dot_dtype),
                    preferred_element_type=jnp.float32)
        h = jnp.maximum(h + b1_ref[...], 0.0)                   # (Cmid, Lt) f32

        # ---- conv2 (3x3, pad=1) with bn3 folded ------------------------------
        # Build all 9 rolled+masked taps into one stacked (9*Cmid, Lt) operand
        # (VMEM scratch), then contract them in a SINGLE K=9*Cmid matmul: the
        # MXU accumulates along K internally, so there are no per-tap VPU adds
        # and only one weight-push / result-pop sequence.
        for k in range(9):
            dy, dx = k // 3 - 1, k % 3 - 1
            delta = dy * W + dx
            if delta == 0:
                tap = h
            else:
                # tap[:, b*HW + y*W + x] = h[:, b*HW + (y+dy)*W + (x+dx)],
                # zero outside the image.  Rolls never leak across the images
                # packed into the lane axis: any cross-image (or wrap-around)
                # source position is zeroed by the precomputed edge mask.
                tap = pltpu.roll(h, shift=(-delta) % Lt, axis=1)
                tap = tap * mask_ref[pl.ds(k, 1), :]             # (1, Lt) mask
            stk_ref[k * Cmid:(k + 1) * Cmid, :] = tap

        acc = jnp.dot(w2_ref[...], stk_ref[...].astype(dot_dtype),
                      preferred_element_type=jnp.float32)        # (Cmid, Lt)

        if stride > 1:
            # TODO(synk): stride>1 subsamples the stride-1 result (cross-lane
            # strided gather + 1-1/s^2 wasted conv2 work); production strides
            # should compute only the strided output columns instead.
            acc = acc.reshape(Cmid, Bt, H, W)[:, :, ::stride, ::stride]
            acc = acc.reshape(Cmid, Bt * Ho * Wo)

        h2 = jnp.maximum(acc + b2_ref[...], 0.0)                 # folded bn3 + relu

        # ---- conv3 (1x1) ----------------------------------------------- MXU
        out = jnp.dot(w3_ref[...], h2.astype(dot_dtype),
                      preferred_element_type=jnp.float32)
        # NOTE: the PyTorch forward never adds `residual`; neither do we.
        o_ref[...] = (out + b3_ref[...]).astype(o_ref.dtype)     # lane-dense store

    return kernel


def _fold_bn(gamma, beta, mean, var, eps=1e-5):
    scale = gamma / jnp.sqrt(var + eps)
    shift = beta - mean * scale
    return scale, shift


def _edge_masks(H, W, Bt):
    """(9, Bt*H*W) f32: mask[k, b*HW + y*W + x] = 1 iff (y+dy, x+dx) in-bounds."""
    pos = np.arange(H * W)
    yy, xx = pos // W, pos % W
    m = np.zeros((9, H * W), np.float32)
    for k in range(9):
        dy, dx = k // 3 - 1, k % 3 - 1
        m[k] = ((yy + dy >= 0) & (yy + dy < H) & (xx + dx >= 0) & (xx + dx < W))
    return jnp.asarray(np.tile(m, (1, Bt)))


def _pick_batch_tile(N, HW, lane_target=4096):
    """Largest divisor of N whose folded lane width Bt*HW stays within the
    target: maximizes work per grid step (amortizes per-step overhead) while
    keeping the per-step VMEM footprint modest at production sizes."""
    best = 1
    for d in range(1, N + 1):
        if N % d == 0 and d * HW <= max(lane_target, HW):
            best = d
    return best


def residual_block_forward(x_nchw, params, stride=1, use_bf16=True):
    """x_nchw: (N, numIn, H, W) f32 -> (N, numOut, Ho, Wo) f32."""
    N, Cin, H, W = x_nchw.shape
    HW = H * W
    Ho = (H - 1) // stride + 1
    Wo = (W - 1) // stride + 1
    HoWo = Ho * Wo

    w1 = params["conv1_w"][:, :, 0, 0]                       # (Cmid, Cin)
    w3 = params["conv3_w"][:, :, 0, 0]                       # (Cout, Cmid)
    Cmid, Cout = w1.shape[0], w3.shape[0]

    dot_dtype = jnp.bfloat16 if use_bf16 else jnp.float32    # MXU operands only

    s1, t1 = _fold_bn(params["bn1_g"], params["bn1_b"], params["bn1_m"], params["bn1_v"])
    s2, t2 = _fold_bn(params["bn2_g"], params["bn2_b"], params["bn2_m"], params["bn2_v"])
    s3, t3 = _fold_bn(params["bn3_g"], params["bn3_b"], params["bn3_m"], params["bn3_v"])

    # Fold bn2 into conv1, bn3 into conv2.  conv2 is flattened tap-major to
    # (Cmid, 9*Cmid) so the kernel contracts all 9 taps with ONE matmul.
    w1f = (w1 * s2[:, None]).astype(dot_dtype)
    b1f = (s2 * params["conv1_b"] + t2).reshape(Cmid, 1)
    w2f = (jnp.transpose(params["conv2_w"], (0, 2, 3, 1)).reshape(Cmid, 9 * Cmid)
           * s3[:, None]).astype(dot_dtype)
    b2f = (s3 * params["conv2_b"] + t3).reshape(Cmid, 1)
    w3f = w3.astype(dot_dtype)
    b3 = params["conv3_b"].reshape(Cout, 1)

    # Fold batch into the lane dim: (N, Cin, H, W) -> (Cin, N*HW).  Each grid
    # step covers Bt whole images, so every matmul RHS / output store is a
    # wide lane-dense slab (layout plumbing only; transposes happen in XLA).
    Bt = _pick_batch_tile(N, HW)
    Lt, Lto = Bt * HW, Bt * HoWo
    x_cl = jnp.transpose(x_nchw, (1, 0, 2, 3)).reshape(Cin, N * HW)
    mask = _edge_masks(H, W, Bt)

    def const(shape):
        # Grid-constant blocks (weights / scales / masks): fetched once, kept
        # resident.  At production channel counts mark these with
        # pipeline_mode=pl.Buffered(1) so they are not double-buffered
        # (VMEM headroom on v7x's 64 MiB); negligible at these toy sizes.
        return pl.BlockSpec(shape, lambda i: (0,) * len(shape))

    grid = (N // Bt,)
    flops = 2 * N * HW * Cmid * (Cin + 9 * Cmid) + 2 * N * HoWo * Cmid * Cout
    wbytes = jnp.dtype(dot_dtype).itemsize
    bytes_accessed = int(4 * (x_cl.size + Cout * N * HoWo + mask.size
                              + 2 * Cin + 3 * Cmid + Cout)
                         + wbytes * (w1f.size + w2f.size + w3f.size))

    out_flat = pl.pallas_call(
        _make_resblock_kernel(H, W, Bt, stride, dot_dtype),
        grid=grid,
        in_specs=[
            pl.BlockSpec((Cin, Lt), lambda i: (0, i)),       # activations (pipelined)
            const((Cin, 1)), const((Cin, 1)),                # bn1 scale/shift
            const((Cmid, Cin)), const((Cmid, 1)),            # conv1 (bn2 folded)
            const((9, Lt)),                                  # precomputed edge masks
            const((Cmid, 9 * Cmid)), const((Cmid, 1)),       # conv2 taps (bn3 folded)
            const((Cout, Cmid)), const((Cout, 1)),           # conv3
        ],
        out_specs=pl.BlockSpec((Cout, Lto), lambda i: (0, i)),
        out_shape=jax.ShapeDtypeStruct((Cout, N * HoWo), x_nchw.dtype),
        scratch_shapes=[pltpu.VMEM((9 * Cmid, Lt), jnp.float32)],  # stacked taps
        compiler_params=pltpu.CompilerParams(
            dimension_semantics=("parallel",),   # shard lane-tiles across TCs (v7x)
            vmem_limit_bytes=32 * 1024 * 1024,   # tiny footprint here; keep <48 MiB at scale
        ),
        cost_estimate=pl.CostEstimate(
            flops=flops, transcendentals=0, bytes_accessed=bytes_accessed),
    )(x_cl, s1.reshape(Cin, 1), t1.reshape(Cin, 1),
      w1f, b1f, mask, w2f, b2f, w3f, b3)

    # Layout plumbing back to NCHW (cheap XLA reshape/transpose).
    return jnp.transpose(out_flat.reshape(Cout, N, Ho, Wo), (1, 0, 2, 3))


def _reference_forward(x, params, stride=1):
    """Pure-JAX NCHW reference (lax conv) for correctness checking."""
    eps = 1e-5

    def bn(h, g, b, m, v):
        return ((h - m[None, :, None, None]) / jnp.sqrt(v[None, :, None, None] + eps)
                * g[None, :, None, None] + b[None, :, None, None])

    dn = ("NCHW", "OIHW", "NCHW")
    h = jax.nn.relu(bn(x, params["bn1_g"], params["bn1_b"], params["bn1_m"], params["bn1_v"]))
    h = jax.lax.conv_general_dilated(h, params["conv1_w"], (1, 1), ((0, 0), (0, 0)),
                                     dimension_numbers=dn) + params["conv1_b"][None, :, None, None]
    h = jax.nn.relu(bn(h, params["bn2_g"], params["bn2_b"], params["bn2_m"], params["bn2_v"]))
    h = jax.lax.conv_general_dilated(h, params["conv2_w"], (stride, stride), ((1, 1), (1, 1)),
                                     dimension_numbers=dn) + params["conv2_b"][None, :, None, None]
    h = jax.nn.relu(bn(h, params["bn3_g"], params["bn3_b"], params["bn3_m"], params["bn3_v"]))
    out = jax.lax.conv_general_dilated(h, params["conv3_w"], (1, 1), ((0, 0), (0, 0)),
                                       dimension_numbers=dn) + params["conv3_b"][None, :, None, None]
    return out


def init_params(key, num_in, num_out):
    num_mid = num_out // 2
    ks = jax.random.split(key, 18)
    p = {}
    # PyTorch-layout conv weights: (out, in, kh, kw)
    p["conv1_w"] = 0.1 * jax.random.normal(ks[0], (num_mid, num_in, 1, 1), jnp.float32)
    p["conv1_b"] = 0.1 * jax.random.normal(ks[1], (num_mid,), jnp.float32)
    p["conv2_w"] = 0.1 * jax.random.normal(ks[2], (num_mid, num_mid, 3, 3), jnp.float32)
    p["conv2_b"] = 0.1 * jax.random.normal(ks[3], (num_mid,), jnp.float32)
    p["conv3_w"] = 0.1 * jax.random.normal(ks[4], (num_out, num_mid, 1, 1), jnp.float32)
    p["conv3_b"] = 0.1 * jax.random.normal(ks[5], (num_out,), jnp.float32)
    # BatchNorm eval-mode params (gamma, beta, running mean/var)
    for i, c, base in zip((1, 2, 3), (num_in, num_mid, num_mid), (6, 10, 14)):
        p[f"bn{i}_g"] = 1.0 + 0.1 * jax.random.normal(ks[base], (c,), jnp.float32)
        p[f"bn{i}_b"] = 0.1 * jax.random.normal(ks[base + 1], (c,), jnp.float32)
        p[f"bn{i}_m"] = 0.1 * jax.random.normal(ks[base + 2], (c,), jnp.float32)
        p[f"bn{i}_v"] = 0.9 + jnp.abs(0.1 * jax.random.normal(ks[base + 3], (c,), jnp.float32))
    return p


if __name__ == "__main__":
    key = jax.random.PRNGKey(0)
    kx, kp = jax.random.split(key)

    N, num_in, num_out, H, W = 2, 4, 8, 16, 16
    stride = 1

    x = jax.random.normal(kx, (N, num_in, H, W), jnp.float32)
    params = init_params(kp, num_in, num_out)

    out = jax.block_until_ready(residual_block_forward(x, params, stride=stride))
    ref = jax.block_until_ready(_reference_forward(x, params, stride=stride))

    # bf16 MXU operands with f32 accumulation -> loosened tolerance vs f32 ref.
    np.testing.assert_allclose(np.asarray(out), np.asarray(ref), rtol=3e-2, atol=3e-2)
    assert out.shape == (N, num_out, H, W)

    print("KERNEL_OK")
</pallas_src>

<mosaic_0001>
module attributes {stable_mosaic.version = 11 : i64} {
  func.func @kernel(%arg0: i32, %arg1: memref<4x512xf32, #tpu.memory_space<vmem>>, %arg2: memref<4x1xf32, #tpu.memory_space<vmem>>, %arg3: memref<4x1xf32, #tpu.memory_space<vmem>>, %arg4: memref<4x4xbf16, #tpu.memory_space<vmem>>, %arg5: memref<4x1xf32, #tpu.memory_space<vmem>>, %arg6: memref<9x512xf32, #tpu.memory_space<vmem>>, %arg7: memref<4x36xbf16, #tpu.memory_space<vmem>>, %arg8: memref<4x1xf32, #tpu.memory_space<vmem>>, %arg9: memref<8x4xbf16, #tpu.memory_space<vmem>>, %arg10: memref<8x1xf32, #tpu.memory_space<vmem>>, %arg11: memref<8x512xf32, #tpu.memory_space<vmem>>, %arg12: memref<36x512xf32, #tpu.memory_space<vmem>>) attributes {dimension_semantics = [#tpu.dimension_semantics<parallel>], iteration_bounds = array<i64: 1>, scalar_prefetch = 0 : i64, scratch_operands = 1 : i64, tpu.core_type = #tpu.core_type<tc>, window_params = [{transform_indices = @transform_0, window_bounds = array<i64: 4, 512>}, {pipeline_mode = #tpu.pipeline_mode<synchronous>, transform_indices = @transform_1, window_bounds = array<i64: 4, 1>}, {pipeline_mode = #tpu.pipeline_mode<synchronous>, transform_indices = @transform_2, window_bounds = array<i64: 4, 1>}, {pipeline_mode = #tpu.pipeline_mode<synchronous>, transform_indices = @transform_3, window_bounds = array<i64: 4, 4>}, {pipeline_mode = #tpu.pipeline_mode<synchronous>, transform_indices = @transform_4, window_bounds = array<i64: 4, 1>}, {pipeline_mode = #tpu.pipeline_mode<synchronous>, transform_indices = @transform_5, window_bounds = array<i64: 9, 512>}, {pipeline_mode = #tpu.pipeline_mode<synchronous>, transform_indices = @transform_6, window_bounds = array<i64: 4, 36>}, {pipeline_mode = #tpu.pipeline_mode<synchronous>, transform_indices = @transform_7, window_bounds = array<i64: 4, 1>}, {pipeline_mode = #tpu.pipeline_mode<synchronous>, transform_indices = @transform_8, window_bounds = array<i64: 8, 4>}, {pipeline_mode = #tpu.pipeline_mode<synchronous>, transform_indices = @transform_9, window_bounds = array<i64: 8, 1>}, {transform_indices = @transform_10, window_bounds = array<i64: 8, 512>}]} {
    %c0 = arith.constant 0 : index
    %c0_0 = arith.constant 0 : index
    %0 = vector.load %arg1[%c0, %c0_0] : memref<4x512xf32, #tpu.memory_space<vmem>>, vector<4x512xf32>
    %c0_1 = arith.constant 0 : index
    %c0_2 = arith.constant 0 : index
    %1 = vector.load %arg2[%c0_1, %c0_2] : memref<4x1xf32, #tpu.memory_space<vmem>>, vector<4x1xf32>
    %2 = vector.broadcast %1 : vector<4x1xf32> to vector<4x512xf32>
    %3 = arith.mulf %0, %2 : vector<4x512xf32>
    %c0_3 = arith.constant 0 : index
    %c0_4 = arith.constant 0 : index
    %4 = vector.load %arg3[%c0_3, %c0_4] : memref<4x1xf32, #tpu.memory_space<vmem>>, vector<4x1xf32>
    %5 = vector.broadcast %4 : vector<4x1xf32> to vector<4x512xf32>
    %6 = arith.addf %3, %5 : vector<4x512xf32>
    %cst = arith.constant 0.000000e+00 : f32
    %7 = vector.broadcast %cst : f32 to vector<4x512xf32>
    %8 = arith.maximumf %6, %7 : vector<4x512xf32>
    %c0_5 = arith.constant 0 : index
    %c0_6 = arith.constant 0 : index
    %9 = vector.load %arg4[%c0_5, %c0_6] : memref<4x4xbf16, #tpu.memory_space<vmem>>, vector<4x4xbf16>
    %10 = arith.truncf %8 : vector<4x512xf32> to vector<4x512xbf16>
    %cst_7 = arith.constant dense<0.000000e+00> : vector<4x512xf32>
    %11 = tpu.matmul %9, %10, %cst_7 {dimension_numbers = #tpu.dot_dimension_numbers<[1], [0], [0], [1], [0, 0, 1, 1], [], []>} : vector<4x4xbf16>, vector<4x512xbf16>, vector<4x512xf32> -> vector<4x512xf32>
    %c0_8 = arith.constant 0 : index
    %c0_9 = arith.constant 0 : index
    %12 = vector.load %arg5[%c0_8, %c0_9] : memref<4x1xf32, #tpu.memory_space<vmem>>, vector<4x1xf32>
    %13 = vector.broadcast %12 : vector<4x1xf32> to vector<4x512xf32>
    %14 = arith.addf %11, %13 : vector<4x512xf32>
    %cst_10 = arith.constant 0.000000e+00 : f32
    %15 = vector.broadcast %cst_10 : f32 to vector<4x512xf32>
    %16 = arith.maximumf %14, %15 : vector<4x512xf32>
    %c17_i32 = arith.constant 17 : i32
    %17 = tpu.dynamic_rotate %16 by %c17_i32 dim 1 : vector<4x512xf32>, i32 -> vector<4x512xf32>
    %c0_11 = arith.constant 0 : index
    %c0_12 = arith.constant 0 : index
    %18 = vector.load %arg6[%c0_11, %c0_12] : memref<9x512xf32, #tpu.memory_space<vmem>>, vector<1x512xf32>
    %19 = vector.broadcast %18 : vector<1x512xf32> to vector<4x512xf32>
    %20 = arith.mulf %17, %19 : vector<4x512xf32>
    %c0_13 = arith.constant 0 : index
    %c0_14 = arith.constant 0 : index
    %21 = vector.load %arg12[%c0_13, %c0_14] : memref<36x512xf32, #tpu.memory_space<vmem>>, vector<4x512xf32>
    tpu.vector_store %arg12[%c0_13, %c0_14], %20 {strides = array<i32>} : memref<36x512xf32, #tpu.memory_space<vmem>>, vector<4x512xf32>,
    %c16_i32 = arith.constant 16 : i32
    %22 = tpu.dynamic_rotate %16 by %c16_i32 dim 1 : vector<4x512xf32>, i32 -> vector<4x512xf32>
    %c1 = arith.constant 1 : index
    %c0_15 = arith.constant 0 : index
    %23 = vector.load %arg6[%c1, %c0_15] : memref<9x512xf32, #tpu.memory_space<vmem>>, vector<1x512xf32>
    %24 = vector.broadcast %23 : vector<1x512xf32> to vector<4x512xf32>
    %25 = arith.mulf %22, %24 : vector<4x512xf32>
    %c4 = arith.constant 4 : index
    %c0_16 = arith.constant 0 : index
    %26 = vector.load %arg12[%c4, %c0_16] : memref<36x512xf32, #tpu.memory_space<vmem>>, vector<4x512xf32>
    tpu.vector_store %arg12[%c4, %c0_16], %25 {strides = array<i32>} : memref<36x512xf32, #tpu.memory_space<vmem>>, vector<4x512xf32>,
    %c15_i32 = arith.constant 15 : i32
    %27 = tpu.dynamic_rotate %16 by %c15_i32 dim 1 : vector<4x512xf32>, i32 -> vector<4x512xf32>
    %c2 = arith.constant 2 : index
    %c0_17 = arith.constant 0 : index
    %28 = vector.load %arg6[%c2, %c0_17] : memref<9x512xf32, #tpu.memory_space<vmem>>, vector<1x512xf32>
    %29 = vector.broadcast %28 : vector<1x512xf32> to vector<4x512xf32>
    %30 = arith.mulf %27, %29 : vector<4x512xf32>
    %c8 = arith.constant 8 : index
    %c0_18 = arith.constant 0 : index
    %31 = vector.load %arg12[%c8, %c0_18] : memref<36x512xf32, #tpu.memory_space<vmem>>, vector<4x512xf32>
    tpu.vector_store %arg12[%c8, %c0_18], %30 {strides = array<i32>} : memref<36x512xf32, #tpu.memory_space<vmem>>, vector<4x512xf32>,
    %c1_i32 = arith.constant 1 : i32
    %32 = tpu.dynamic_rotate %16 by %c1_i32 dim 1 : vector<4x512xf32>, i32 -> vector<4x512xf32>
    %c3 = arith.constant 3 : index
    %c0_19 = arith.constant 0 : index
    %33 = vector.load %arg6[%c3, %c0_19] : memref<9x512xf32, #tpu.memory_space<vmem>>, vector<1x512xf32>
    %34 = vector.broadcast %33 : vector<1x512xf32> to vector<4x512xf32>
    %35 = arith.mulf %32, %34 : vector<4x512xf32>
    %c12 = arith.constant 12 : index
    %c0_20 = arith.constant 0 : index
    %36 = vector.load %arg12[%c12, %c0_20] : memref<36x512xf32, #tpu.memory_space<vmem>>, vector<4x512xf32>
    tpu.vector_store %arg12[%c12, %c0_20], %35 {strides = array<i32>} : memref<36x512xf32, #tpu.memory_space<vmem>>, vector<4x512xf32>,
    %c16 = arith.constant 16 : index
    %c0_21 = arith.constant 0 : index
    %37 = vector.load %arg12[%c16, %c0_21] : memref<36x512xf32, #tpu.memory_space<vmem>>, vector<4x512xf32>
    tpu.vector_store %arg12[%c16, %c0_21], %16 {strides = array<i32>} : memref<36x512xf32, #tpu.memory_space<vmem>>, vector<4x512xf32>,
    %c511_i32 = arith.constant 511 : i32
    %38 = tpu.dynamic_rotate %16 by %c511_i32 dim 1 : vector<4x512xf32>, i32 -> vector<4x512xf32>
    %c5 = arith.constant 5 : index
    %c0_22 = arith.constant 0 : index
    %39 = vector.load %arg6[%c5, %c0_22] : memref<9x512xf32, #tpu.memory_space<vmem>>, vector<1x512xf32>
    %40 = vector.broadcast %39 : vector<1x512xf32> to vector<4x512xf32>
    %41 = arith.mulf %38, %40 : vector<4x512xf32>
    %c20 = arith.constant 20 : index
    %c0_23 = arith.constant 0 : index
    %42 = vector.load %arg12[%c20, %c0_23] : memref<36x512xf32, #tpu.memory_space<vmem>>, vector<4x512xf32>
    tpu.vector_store %arg12[%c20, %c0_23], %41 {strides = array<i32>} : memref<36x512xf32, #tpu.memory_space<vmem>>, vector<4x512xf32>,
    %c497_i32 = arith.constant 497 : i32
    %43 = tpu.dynamic_rotate %16 by %c497_i32 dim 1 : vector<4x512xf32>, i32 -> vector<4x512xf32>
    %c6 = arith.constant 6 : index
    %c0_24 = arith.constant 0 : index
    %44 = vector.load %arg6[%c6, %c0_24] : memref<9x512xf32, #tpu.memory_space<vmem>>, vector<1x512xf32>
    %45 = vector.broadcast %44 : vector<1x512xf32> to vector<4x512xf32>
    %46 = arith.mulf %43, %45 : vector<4x512xf32>
    %c24 = arith.constant 24 : index
    %c0_25 = arith.constant 0 : index
    %47 = vector.load %arg12[%c24, %c0_25] : memref<36x512xf32, #tpu.memory_space<vmem>>, vector<4x512xf32>
    tpu.vector_store %arg12[%c24, %c0_25], %46 {strides = array<i32>} : memref<36x512xf32, #tpu.memory_space<vmem>>, vector<4x512xf32>,
    %c496_i32 = arith.constant 496 : i32
    %48 = tpu.dynamic_rotate %16 by %c496_i32 dim 1 : vector<4x512xf32>, i32 -> vector<4x512xf32>
    %c7 = arith.constant 7 : index
    %c0_26 = arith.constant 0 : index
    %49 = vector.load %arg6[%c7, %c0_26] : memref<9x512xf32, #tpu.memory_space<vmem>>, vector<1x512xf32>
    %50 = vector.broadcast %49 : vector<1x512xf32> to vector<4x512xf32>
    %51 = arith.mulf %48, %50 : vector<4x512xf32>
    %c28 = arith.constant 28 : index
    %c0_27 = arith.constant 0 : index
    %52 = vector.load %arg12[%c28, %c0_27] : memref<36x512xf32, #tpu.memory_space<vmem>>, vector<4x512xf32>
    tpu.vector_store %arg12[%c28, %c0_27], %51 {strides = array<i32>} : memref<36x512xf32, #tpu.memory_space<vmem>>, vector<4x512xf32>,
    %c495_i32 = arith.constant 495 : i32
    %53 = tpu.dynamic_rotate %16 by %c495_i32 dim 1 : vector<4x512xf32>, i32 -> vector<4x512xf32>
    %c8_28 = arith.constant 8 : index
    %c0_29 = arith.constant 0 : index
    %54 = vector.load %arg6[%c8_28, %c0_29] : memref<9x512xf32, #tpu.memory_space<vmem>>, vector<1x512xf32>
    %55 = vector.broadcast %54 : vector<1x512xf32> to vector<4x512xf32>
    %56 = arith.mulf %53, %55 : vector<4x512xf32>
    %c32 = arith.constant 32 : index
    %c0_30 = arith.constant 0 : index
    %57 = vector.load %arg12[%c32, %c0_30] : memref<36x512xf32, #tpu.memory_space<vmem>>, vector<4x512xf32>
    tpu.vector_store %arg12[%c32, %c0_30], %56 {strides = array<i32>} : memref<36x512xf32, #tpu.memory_space<vmem>>, vector<4x512xf32>,
    %c0_31 = arith.constant 0 : index
    %c0_32 = arith.constant 0 : index
    %58 = vector.load %arg7[%c0_31, %c0_32] : memref<4x36xbf16, #tpu.memory_space<vmem>>, vector<4x36xbf16>
    %c0_33 = arith.constant 0 : index
    %c0_34 = arith.constant 0 : index
    %59 = vector.load %arg12[%c0_33, %c0_34] : memref<36x512xf32, #tpu.memory_space<vmem>>, vector<36x512xf32>
    %60 = arith.truncf %59 : vector<36x512xf32> to vector<36x512xbf16>
    %cst_35 = arith.constant dense<0.000000e+00> : vector<4x512xf32>
    %61 = tpu.matmul %58, %60, %cst_35 {dimension_numbers = #tpu.dot_dimension_numbers<[1], [0], [0], [1], [0, 0, 1, 1], [], []>} : vector<4x36xbf16>, vector<36x512xbf16>, vector<4x512xf32> -> vector<4x512xf32>
    %c0_36 = arith.constant 0 : index
    %c0_37 = arith.constant 0 : index
    %62 = vector.load %arg8[%c0_36, %c0_37] : memref<4x1xf32, #tpu.memory_space<vmem>>, vector<4x1xf32>
    %63 = vector.broadcast %62 : vector<4x1xf32> to vector<4x512xf32>
    %64 = arith.addf %61, %63 : vector<4x512xf32>
    %cst_38 = arith.constant 0.000000e+00 : f32
    %65 = vector.broadcast %cst_38 : f32 to vector<4x512xf32>
    %66 = arith.maximumf %64, %65 : vector<4x512xf32>
    %c0_39 = arith.constant 0 : index
    %c0_40 = arith.constant 0 : index
    %67 = vector.load %arg9[%c0_39, %c0_40] : memref<8x4xbf16, #tpu.memory_space<vmem>>, vector<8x4xbf16>
    %68 = arith.truncf %66 : vector<4x512xf32> to vector<4x512xbf16>
    %cst_41 = arith.constant dense<0.000000e+00> : vector<8x512xf32>
    %69 = tpu.matmul %67, %68, %cst_41 {dimension_numbers = #tpu.dot_dimension_numbers<[1], [0], [0], [1], [0, 0, 1, 1], [], []>} : vector<8x4xbf16>, vector<4x512xbf16>, vector<8x512xf32> -> vector<8x512xf32>
    %c0_42 = arith.constant 0 : index
    %c0_43 = arith.constant 0 : index
    %70 = vector.load %arg10[%c0_42, %c0_43] : memref<8x1xf32, #tpu.memory_space<vmem>>, vector<8x1xf32>
    %71 = vector.broadcast %70 : vector<8x1xf32> to vector<8x512xf32>
    %72 = arith.addf %69, %71 : vector<8x512xf32>
    %c0_44 = arith.constant 0 : index
    %c0_45 = arith.constant 0 : index
    %73 = vector.load %arg11[%c0_44, %c0_45] : memref<8x512xf32, #tpu.memory_space<vmem>>, vector<8x512xf32>
    tpu.vector_store %arg11[%c0_44, %c0_45], %72 {strides = array<i32>} : memref<8x512xf32, #tpu.memory_space<vmem>>, vector<8x512xf32>,
    return
  }
  func.func @transform_0(%arg0: i32) -> (i32, i32) {
    %c0_i32 = arith.constant 0 : i32
    %c0_i32_0 = arith.constant 0 : i32
    return %c0_i32, %arg0 : i32, i32
  }
  func.func @transform_1(%arg0: i32) -> (i32, i32) {
    %c0_i32 = arith.constant 0 : i32
    %c0_i32_0 = arith.constant 0 : i32
    %c0_i32_1 = arith.constant 0 : i32
    return %c0_i32, %c0_i32_0 : i32, i32
  }
  func.func @transform_2(%arg0: i32) -> (i32, i32) {
    %c0_i32 = arith.constant 0 : i32
    %c0_i32_0 = arith.constant 0 : i32
    %c0_i32_1 = arith.constant 0 : i32
    return %c0_i32, %c0_i32_0 : i32, i32
  }
  func.func @transform_3(%arg0: i32) -> (i32, i32) {
    %c0_i32 = arith.constant 0 : i32
    %c0_i32_0 = arith.constant 0 : i32
    %c0_i32_1 = arith.constant 0 : i32
    return %c0_i32, %c0_i32_0 : i32, i32
  }
  func.func @transform_4(%arg0: i32) -> (i32, i32) {
    %c0_i32 = arith.constant 0 : i32
    %c0_i32_0 = arith.constant 0 : i32
    %c0_i32_1 = arith.constant 0 : i32
    return %c0_i32, %c0_i32_0 : i32, i32
  }
  func.func @transform_5(%arg0: i32) -> (i32, i32) {
    %c0_i32 = arith.constant 0 : i32
    %c0_i32_0 = arith.constant 0 : i32
    %c0_i32_1 = arith.constant 0 : i32
    return %c0_i32, %c0_i32_0 : i32, i32
  }
  func.func @transform_6(%arg0: i32) -> (i32, i32) {
    %c0_i32 = arith.constant 0 : i32
    %c0_i32_0 = arith.constant 0 : i32
    %c0_i32_1 = arith.constant 0 : i32
    return %c0_i32, %c0_i32_0 : i32, i32
  }
  func.func @transform_7(%arg0: i32) -> (i32, i32) {
    %c0_i32 = arith.constant 0 : i32
    %c0_i32_0 = arith.constant 0 : i32
    %c0_i32_1 = arith.constant 0 : i32
    return %c0_i32, %c0_i32_0 : i32, i32
  }
  func.func @transform_8(%arg0: i32) -> (i32, i32) {
    %c0_i32 = arith.constant 0 : i32
    %c0_i32_0 = arith.constant 0 : i32
    %c0_i32_1 = arith.constant 0 : i32
    return %c0_i32, %c0_i32_0 : i32, i32
  }
  func.func @transform_9(%arg0: i32) -> (i32, i32) {
    %c0_i32 = arith.constant 0 : i32
    %c0_i32_0 = arith.constant 0 : i32
    %c0_i32_1 = arith.constant 0 : i32
    return %c0_i32, %c0_i32_0 : i32, i32
  }
  func.func @transform_10(%arg0: i32) -> (i32, i32) {
    %c0_i32 = arith.constant 0 : i32
    %c0_i32_0 = arith.constant 0 : i32
    return %c0_i32, %arg0 : i32, i32
  }
}

</mosaic_0001>

<bundles_post_ra>
// kernel: tpu_custom_call.1
= control target key start
LH: loop header
LB: loop body
LE: loop exit
PB: predicated region body
PF: predicated region fallthrough
CT: control target
= control target key end

     0   :  { %15 = vsyncpa [#allocation4], 0  ;;  %s1194_s0 = inlined_call_operand.vmem [shape: f32[4,512], index: 0, kind: input, shape index: {}]   ;;  %s1195_s1 = inlined_call_operand.vmem [shape: f32[4,1], index: 1, kind: input, shape index: {}]   ;;  %s1196_s2 = inlined_call_operand.vmem [shape: f32[4,1], index: 2, kind: input, shape index: {}]   ;;  %s1197_s3 = inlined_call_operand.vmem [shape: bf16[4,4], index: 3, kind: input, shape index: {}]   ;;  %s1198_s4 = inlined_call_operand.vmem [shape: f32[4,1], index: 4, kind: input, shape index: {}]   ;;  %s1199_s5 = inlined_call_operand.hbm [shape: f32[9,512], index: 5, kind: input, shape index: {}]   ;;  %s1200_s6 = inlined_call_operand.vmem [shape: bf16[4,36], index: 6, kind: input, shape index: {}]   ;;  %s1201_s7 = inlined_call_operand.vmem [shape: f32[4,1], index: 7, kind: input, shape index: {}]   ;;  %s1202_s8 = inlined_call_operand.vmem [shape: bf16[8,4], index: 8, kind: input, shape index: {}]   ;;  %s1203_s9 = inlined_call_operand.vmem [shape: f32[8,1], index: 9, kind: input, shape index: {}]   ;;  %s1204_s10 = inlined_call_operand.hbm [shape: f32[8,512], index: 10, kind: output, shape index: {}]  }
   0x1   :  { %16 = vsyncpa [#allocation5], 0  ;;  %s950_s13 = smov [#allocation3]  }
   0x2   :  { %s32_s14 = sshll.u32 %s950_s13, 4  ;;  %s33_s14 = int_to_ptr.vmem [resolvable:$true] %s32_s14 }
   0x3   :  { %s914_s15 = scalar_lea.vmem %s33_s14, 1024  ;;  %p919_p1 = scmp.lt.s32.totalorder %s33_s14, %s33_s14 }
   0x4   :  { %p915_p0 = scmp.ne.s32.totalorder %s33_s14, %s914_s15  ;;  %p920_p2 = scmp.lt.s32.totalorder %s914_s15, %s914_s15 }
   0x6   :  { %p921_p3 = por %p920_p2, %p919_p1 }
   0x8   :  { %p922_p4 = pnand %p921_p3, %p915_p0 }
   0xa   :  { %925 = shalt.err (!%p922_p4)
}
   0xb   :  { %s951_s16 = smov 512   ;;  %s952_s17 = smov 32  }
   0xc   :  { %38 = dma.hbm_to_vmem [thread:$0]  %s1199_s5, 1024, %s33_s14, [#allocation4], %s951_s16, %s951_s16, %s952_s17  }
   0xd   :  { %946 = dma.done.wait [#allocation4], 1024  }
   0xe   :  { %947 = vsyncadd [#allocation4], 4294966272  ;;  %v953_v0 = vmov 0   ;;  %v53_v1 = vld [vmem:[%s1195_s1] sm:$0xf]  ;;  %v61_v6 = vlaneseq  ;;  %v52_v13 = vld [vmem:[%s1194_s0 + $0x8] sm:$0xff] }
   0xf   :  { %904 = vset.pattern.permute.xlu0 %v953_v0  ;;  %151 = vmatprep.mubr.bf16.mxu0 %v953_v0  ;;  %v68_v2 = vld [vmem:[%s1196_s2] sm:$0xf]  ;;  %v954_v4 = vmov 839922192   ;;  %vm106_vm0 = vcmask 1041408   ;;  %vm102_vm1 = vcmask 31744  }
  0x10   :  { %192 = vmatprep.mubr.bf16.mxu1 %v953_v0  ;;  %905 = vset.pattern.permute.xlu1 %v953_v0  ;;  %v96_v3 = vld [vmem:[%s1198_s4] sm:$0xf]  ;;  %v59_v5 = vunpack.c.l.s4 %v954_v4  ;;  %v1036_v8 = vshrl.u32 %v61_v6, 7  ;;  %s956_s27 = smov 127   ;;  %s957_s28 = smov 112   ;;  %v1063_v50 = vand.u32 127, %v61_v6 }
  0x11   :  { %56 = vperm.xlu0 %904, %v53_v1   ;;  %99 = vperm.xlu1 %905, %v96_v3   ;;  %v51_v12 = vld [vmem:[%s1194_s0] sm:$0xff]  ;;  %s958_s29 = smov 113   ;;  %s959_s30 = smov 16   ;;  %vm649_vm10 = vcmask 293888  }
  0x12   :  { %v60_v7 = vunpack.c.0.s8 %v59_v5  ;;  %v85_v30 = vld [vmem:[%s1197_s3] sm:$0x3]  ;;  %s955_s3 = smov 111   ;;  %s960_s11 = smov 1   ;;  %v1066_v51 = vsub.s32 0, %v1036_v8  ;;  %v1069_v53 = vsub.s32 1, %v1036_v8 }
  0x13   :  { %s961_s12 = smov 17   ;;  %s962_s13 = smov 15   ;;  %v643_v48 = vld [vmem:[%s1201_s7] sm:$0xf]  ;;  %v1072_v54 = vsub.s32 2, %v1036_v8  ;;  %v1075_v55 = vsub.s32 3, %v1036_v8 }
  0x14   :  { %v63_v9 = vsub.s32 %v60_v7, %v1036_v8  ;;  %v756_v49 = vld [vmem:[%s1203_s9] sm:$0xff]  ;;  %vm574_vm2 = vcmp.lt.s32.totalorder %v1063_v50, 111  ;;  %vm418_vm3 = vcmp.lt.s32.totalorder %v1063_v50, 127  ;;  %vm518_vm4 = vcmp.lt.s32.totalorder %v1063_v50, 112  ;;  %s963_s19 = smov [#allocation6]  }
  0x15   :  { %71 = vperm.xlu0 %904, %v68_v2   ;;  %v580_v52 = vld [vmem:[#allocation3 + $0x20] ss:$8 sm:$0xf]  ;;  %v424_v3 = vld [vmem:[#allocation3 + $0x5] ss:$8 sm:$0xf] }
  0x16   :  { %v585_v57 = vrot.slane %v580_v52, %v1066_v51  ;;  %v589_v59 = vrot.slane %v580_v52, %v1069_v53  ;;  %v593_v63 = vrot.slane %v580_v52, %v1072_v54  ;;  %v597_v1 = vrot.slane %v580_v52, %v1075_v55  ;;  %s869_s20 = sshll.u32 %s963_s19, 4  ;;  %s870_s20 = int_to_ptr.vmem [resolvable:$true] %s869_s20 }
  0x17   :  { %vm474_vm5 = vcmp.lt.s32.totalorder %v1063_v50, 113  ;;  %vm258_vm6 = vcmp.lt.s32.totalorder %v1063_v50, 16  ;;  %vm358_vm7 = vcmp.lt.s32.totalorder %v1063_v50, 1  ;;  %vm215_vm8 = vcmp.lt.s32.totalorder %v1063_v50, 17  ;;  %p931_p6 = scmp.lt.s32.totalorder %s870_s20, %s870_s20 }
  0x18   :  { %vm314_vm9 = vcmp.lt.s32.totalorder %v1063_v50, 15  ;;  %v610_v50 = vld [vmem:[%s1200_s6] sm:$0x3] }
  0x8c   :  { %v57_v10 = vpop.permute.xlu0 %56  ;;  %v100_v31 = vpop.permute.xlu1 %99 }
  0x8d   :  { %v64_v11 = vrot.slane %v57_v10, %v63_v9 }
  0x8f   :  { %v66_v15 = vmul.f32 %v64_v11, %v51_v12  ;;  %v67_v16 = vmul.f32 %v64_v11, %v52_v13  ;;  %v429_v11 = vrot.slane %v424_v3, %v1066_v51  ;;  %v433_v13 = vrot.slane %v424_v3, %v1069_v53 }
  0x90   :  { %v72_v14 = vpop.permute.xlu0 %71 }
  0x91   :  { %v79_v17 = vrot.slane %v72_v14, %v63_v9 }
  0x93   :  { %v81_v18 = vadd.f32 %v79_v17, %v66_v15  ;;  %v82_v19 = vadd.f32 %v79_v17, %v67_v16  ;;  %v437_v17 = vrot.slane %v424_v3, %v1072_v54 }
  0x95   :  { %v83_v20 = vmax.f32 %v81_v18, 0.0  ;;  %v84_v21 = vmax.f32 %v82_v19, 0.0  ;;  %v441_v18 = vrot.slane %v424_v3, %v1075_v55  ;;  %v524_v19 = vld [vmem:[#allocation3 + $0x7] ss:$8 sm:$0xf] }
  0x97   :  { %v88_v22 = vcombine.high %v83_v20, %v83_v20  ;;  %v89_v23 = vcombine.high %v84_v21, %v84_v21  ;;  %v92_v24 = vpack.c.bf16 %v83_v20, %v83_v20  ;;  %v94_v25 = vpack.c.bf16 %v84_v21, %v84_v21 }
  0x99   :  { %v93_v26 = vpack.c.bf16 %v88_v22, %v88_v22  ;;  %v95_v27 = vpack.c.bf16 %v89_v23, %v89_v23  ;;  %v108_v28 = vsel %vm106_vm0, %v92_v24, 0  ;;  %v114_v29 = vsel %vm106_vm0, %v94_v25, 0 }
  0x9b   :  { %878 = vmatprep.subr.msk.bf16.mxu0 %vm106_vm0, %v93_v26  ;;  %880 = vmatprep.subr.msk.bf16.mxu1 %vm106_vm0, %v95_v27 }
  0x9c   :  { %134 = vmatpush1.bf16.msra.mxu0 %v108_v28  ;;  %175 = vmatpush1.bf16.msra.mxu1 %v114_v29  ;;  %v529_v28 = vrot.slane %v524_v19, %v1066_v51 }
  0x9f   :  { %879 = vmatmul.mubr.msk.bf16.vlgmr.msra.gmra.mxu0 %vm102_vm1, %v85_v30  ;;  %881 = vmatmul.mubr.msk.bf16.vlgmr.msra.gmra.mxu1 %vm102_vm1, %v85_v30 }
  0xa0   :  { %697 = vmatprep.mubr.bf16.mxu0 %v953_v0  ;;  %738 = vmatprep.mubr.bf16.mxu1 %v953_v0 }
 0x15f   :  { %v153_v32 = vpop.f32.mrf.mxu0  ;;  %v194_v33 = vpop.f32.mrf.mxu1 }
 0x160   :  { %v154_v34 = vadd.f32 %v153_v32, %v100_v31  ;;  %v195_v35 = vadd.f32 %v194_v33, %v100_v31 }
 0x161   :  { %v155_v36 = vpop.f32.mrf.mxu0  ;;  %v196_v37 = vpop.f32.mrf.mxu1 }
 0x162   :  { %v201_v38 = vmax.f32 %v154_v34, 0.0  ;;  %v203_v39 = vmax.f32 %v195_v35, 0.0  ;;  %v156_v40 = vadd.f32 %v155_v36, %v100_v31  ;;  %v197_v41 = vadd.f32 %v196_v37, %v100_v31 }
 0x163   :  { %v157_v42 = vpop.f32.mrf.mxu0  ;;  %v198_v43 = vpop.f32.mrf.mxu1  ;;  %v533_v37 = vrot.slane %v524_v19, %v1069_v53 }
 0x164   :  { %406 = vst [vmem:[#allocation2 + $0x8] sm:$0xf] %v201_v38  ;;  %408 = vst [vmem:[#allocation2 + $0x28] sm:$0xf] %v203_v39  ;;  %v202_v44 = vmax.f32 %v156_v40, 0.0  ;;  %v204_v45 = vmax.f32 %v197_v41, 0.0  ;;  %566 = vrot.lane.b32.xlu1 %v201_v38, %s955_s3 }
 0x165   :  { %v158_v46 = vpop.f32.mrf.mxu0  ;;  %v199_v47 = vpop.f32.mrf.mxu1 }
 0x166   :  { %407 = vst [vmem:[#allocation2 + $0x88] sm:$0xf] %v202_v44  ;;  %409 = vst [vmem:[#allocation2 + $0x40] sm:$0xf] %v204_v45  ;;  %568 = vrot.lane.b32.xlu0 %v202_v44, %s955_s3 }
 0x168   :  { %570 = vrot.lane.b32.xlu1 %v203_v39, %s955_s3 }
 0x16a   :  { %572 = vrot.lane.b32.xlu0 %v204_v45, %s955_s3 }
 0x16c   :  { %410 = vrot.lane.b32.xlu1 %v201_v38, %s956_s27 }
 0x16e   :  { %412 = vrot.lane.b32.xlu0 %v202_v44, %s956_s27 }
 0x170   :  { %414 = vrot.lane.b32.xlu1 %v203_v39, %s956_s27 }
 0x172   :  { %416 = vrot.lane.b32.xlu0 %v204_v45, %s956_s27 }
 0x174   :  { %510 = vrot.lane.b32.xlu1 %v201_v38, %s957_s28 }
 0x176   :  { %512 = vrot.lane.b32.xlu0 %v202_v44, %s957_s28 }
 0x178   :  { %514 = vrot.lane.b32.xlu1 %v203_v39, %s957_s28 }
 0x17a   :  { %516 = vrot.lane.b32.xlu0 %v204_v45, %s957_s28 }
 0x17c   :  { %466 = vrot.lane.b32.xlu1 %v201_v38, %s958_s29 }
 0x17e   :  { %468 = vrot.lane.b32.xlu0 %v202_v44, %s958_s29 }
 0x180   :  { %470 = vrot.lane.b32.xlu1 %v203_v39, %s958_s29 }
 0x182   :  { %472 = vrot.lane.b32.xlu0 %v204_v45, %s958_s29 }
 0x184   :  { %250 = vrot.lane.b32.xlu1 %v201_v38, %s959_s30 }
 0x186   :  { %252 = vrot.lane.b32.xlu0 %v202_v44, %s959_s30 }
 0x188   :  { %254 = vrot.lane.b32.xlu1 %v203_v39, %s959_s30 }
 0x18a   :  { %256 = vrot.lane.b32.xlu0 %v204_v45, %s959_s30 }
 0x18c   :  { %350 = vrot.lane.b32.xlu1 %v201_v38, %s960_s11 }
 0x18e   :  { %352 = vrot.lane.b32.xlu0 %v202_v44, %s960_s11 }
 0x190   :  { %354 = vrot.lane.b32.xlu1 %v203_v39, %s960_s11 }
 0x192   :  { %356 = vrot.lane.b32.xlu0 %v204_v45, %s960_s11 }
 0x194   :  { %205 = vrot.lane.b32.xlu1 %v201_v38, %s961_s12 }
 0x196   :  { %207 = vrot.lane.b32.xlu0 %v202_v44, %s961_s12 }
 0x198   :  { %209 = vrot.lane.b32.xlu1 %v203_v39, %s961_s12 }
 0x19a   :  { %211 = vrot.lane.b32.xlu0 %v204_v45, %s961_s12 }
 0x19c   :  { %306 = vrot.lane.b32.xlu1 %v201_v38, %s962_s13 }
 0x19e   :  { %308 = vrot.lane.b32.xlu0 %v202_v44, %s962_s13 }
 0x1a0   :  { %310 = vrot.lane.b32.xlu1 %v203_v39, %s962_s13 }
 0x1a2   :  { %312 = vrot.lane.b32.xlu0 %v204_v45, %s962_s13 }
 0x1a4   :  { %646 = vperm.xlu1 %905, %v643_v48   ;;  %v537_v48 = vrot.slane %v524_v19, %v1072_v54 }
 0x1a6   :  { %759 = vperm.xlu0 %904, %v756_v49   ;;  %v541_v49 = vrot.slane %v524_v19, %v1075_v55 }
 0x1d6   :  { %v567_v56 = vpop.permute.xlu1 %566 }
 0x1d8   :  { %v569_v58 = vpop.permute.xlu0 %568 }
 0x1d9   :  { %v577_v60 = vsel %vm574_vm2, %v567_v56, %v569_v58 }
 0x1da   :  { %v602_v61 = vmul.f32 %v585_v57, %v577_v60  ;;  %v571_v62 = vpop.permute.xlu1 %570 }
 0x1db   :  { %v576_v2 = vsel %vm574_vm2, %v569_v58, %v571_v62 }
 0x1dc   :  { %606 = vst [vmem:[#allocation2 + $0x20] sm:$0xf] %v602_v61  ;;  %v603_v4 = vmul.f32 %v589_v59, %v576_v2  ;;  %v573_v5 = vpop.permute.xlu0 %572 }
 0x1dd   :  { %v575_v6 = vsel %vm574_vm2, %v571_v62, %v573_v5  ;;  %v578_v7 = vsel %vm574_vm2, %v573_v5, %v567_v56  ;;  %v480_v56 = vld [vmem:[#allocation3 + $0x6] ss:$8 sm:$0xf] }
 0x1de   :  { %607 = vst [vmem:[#allocation2 + $0x48] sm:$0xf] %v603_v4  ;;  %v604_v8 = vmul.f32 %v593_v63, %v575_v6  ;;  %v605_v9 = vmul.f32 %v597_v1, %v578_v7  ;;  %v411_v10 = vpop.permute.xlu1 %410  ;;  %v485_v3 = vrot.slane %v480_v56, %v1066_v51  ;;  %v489_v7 = vrot.slane %v480_v56, %v1069_v53 }
 0x1e0   :  { %608 = vst [vmem:[#allocation2 + $0x70] sm:$0xf] %v604_v8  ;;  %609 = vst [vmem:[#allocation2 + $0x90] sm:$0xf] %v605_v9  ;;  %v413_v12 = vpop.permute.xlu0 %412 }
 0x1e1   :  { %v421_v14 = vsel %vm418_vm3, %v411_v10, %v413_v12 }
 0x1e2   :  { %v446_v15 = vmul.f32 %v429_v11, %v421_v14  ;;  %v415_v16 = vpop.permute.xlu1 %414  ;;  %v493_v11 = vrot.slane %v480_v56, %v1072_v54  ;;  %v264_v14 = vld [vmem:[#allocation3 + $0x1] ss:$8 sm:$0xf] }
 0x1e3   :  { %v420_v20 = vsel %vm418_vm3, %v413_v12, %v415_v16  ;;  %v627_v21 = vld [vmem:[#allocation2 + $0x20] sm:$0xf]  ;;  %v497_v12 = vrot.slane %v480_v56, %v1075_v55 }
 0x1e4   :  { %v454_v22 = vrot.slane %v446_v15, 4  ;;  %v447_v23 = vmul.f32 %v433_v13, %v420_v20  ;;  %v417_v24 = vpop.permute.xlu0 %416  ;;  %v639_v25 = vpack.c.bf16 %v627_v21, %v627_v21 }
 0x1e5   :  { %v419_v26 = vsel %vm418_vm3, %v415_v16, %v417_v24  ;;  %v422_v27 = vsel %vm418_vm3, %v417_v24, %v411_v10  ;;  %v628_v29 = vld [vmem:[#allocation2 + $0x48] sm:$0xf]  ;;  %v277_v24 = vrot.slane %v264_v14, %v1072_v54 }
 0x1e6   :  { %462 = vst [vmem:[#allocation2 + $0x8] sm:$0xf0] %v454_v22  ;;  %v455_v30 = vrot.slane %v447_v23, 4  ;;  %v448_v31 = vmul.f32 %v437_v17, %v419_v26  ;;  %v449_v32 = vmul.f32 %v441_v18, %v422_v27  ;;  %v511_v33 = vpop.permute.xlu1 %510  ;;  %v640_v34 = vpack.c.bf16 %v628_v29, %v628_v29 }
 0x1e7   :  { %v654_v35 = vsel %vm106_vm0, %v639_v25, 0  ;;  %v630_v36 = vld [vmem:[#allocation2 + $0x90] sm:$0xf]  ;;  %v273_v22 = vrot.slane %v264_v14, %v1069_v53  ;;  %v281_v29 = vrot.slane %v264_v14, %v1075_v55 }
 0x1e8   :  { %v629_v38 = vld [vmem:[#allocation2 + $0x70] sm:$0xf]  ;;  %463 = vst [vmem:[#allocation2 + $0x88] sm:$0xf0] %v455_v30  ;;  %v456_v39 = vrot.slane %v448_v31, 4  ;;  %v457_v40 = vrot.slane %v449_v32, 4  ;;  %v513_v41 = vpop.permute.xlu0 %512  ;;  %882 = vmatprep.subr.msk.bf16.mxu0 %vm106_vm0, %v640_v34  ;;  %v642_v42 = vpack.c.bf16 %v630_v36, %v630_v36 }
 0x1e9   :  { %v641_v43 = vpack.c.bf16 %v629_v38, %v629_v38  ;;  %v521_v44 = vsel %vm518_vm4, %v511_v33, %v513_v41  ;;  %676 = vmatpush1.bf16.msra.mxu0 %v654_v35  ;;  %v364_v30 = vld [vmem:[#allocation3 + $0x3] ss:$8 sm:$0xf] }
 0x1ea   :  { %464 = vst [vmem:[#allocation2 + $0x28] sm:$0xf0] %v456_v39  ;;  %465 = vst [vmem:[#allocation2 + $0x40] sm:$0xf0] %v457_v40  ;;  %v546_v45 = vmul.f32 %v529_v28, %v521_v44  ;;  %884 = vmatprep.subr.msk.bf16.mxu1 %vm106_vm0, %v642_v42  ;;  %v515_v46 = vpop.permute.xlu1 %514  ;;  %v269_v28 = vrot.slane %v264_v14, %v1066_v51  ;;  %v373_v38 = vrot.slane %v364_v30, %v1069_v53 }
 0x1eb   :  { %v660_v47 = vsel %vm106_vm0, %v641_v43, 0  ;;  %v520_v52 = vsel %vm518_vm4, %v513_v41, %v515_v46 }
 0x1ec   :  { %717 = vmatpush1.bf16.msra.mxu1 %v660_v47  ;;  %v554_v57 = vrot.slane %v546_v45, 4  ;;  %v547_v58 = vmul.f32 %v533_v37, %v520_v52  ;;  %v517_v59 = vpop.permute.xlu0 %516  ;;  %v377_v52 = vrot.slane %v364_v30, %v1072_v54 }
 0x1ed   :  { %v519_v60 = vsel %vm518_vm4, %v515_v46, %v517_v59  ;;  %v522_v61 = vsel %vm518_vm4, %v517_v59, %v511_v33  ;;  %v619_v46 = vld [vmem:[#allocation2 + $0x8] sm:$0xff] }
 0x1ee   :  { %562 = vst [vmem:[#allocation2 + $0x58] sm:$0xf0] %v554_v57  ;;  %v555_v62 = vrot.slane %v547_v58, 4  ;;  %v548_v63 = vmul.f32 %v537_v48, %v519_v60  ;;  %v549_v1 = vmul.f32 %v541_v49, %v522_v61  ;;  %v467_v2 = vpop.permute.xlu1 %466 }
 0x1ef   :  { %v620_v39 = vld [vmem:[#allocation2 + $0x88] sm:$0xff] }
 0x1f0   :  { %563 = vst [vmem:[#allocation2 + $0x10] sm:$0xf0] %v555_v62  ;;  %v556_v4 = vrot.slane %v548_v63, 4  ;;  %v557_v5 = vrot.slane %v549_v1, 4  ;;  %v469_v6 = vpop.permute.xlu0 %468 }
 0x1f1   :  { %v477_v8 = vsel %vm474_vm5, %v467_v2, %v469_v6  ;;  %v622_v47 = vld [vmem:[#allocation2 + $0x40] sm:$0xff]  ;;  %v621_v56 = vld [vmem:[#allocation2 + $0x28] sm:$0xff] }
 0x1f2   :  { %564 = vst [vmem:[#allocation2 + $0x98] sm:$0xf0] %v556_v4  ;;  %565 = vst [vmem:[#allocation2 + $0x60] sm:$0xf0] %v557_v5  ;;  %v502_v9 = vmul.f32 %v485_v3, %v477_v8  ;;  %v471_v10 = vpop.permute.xlu1 %470  ;;  %v369_v3 = vrot.slane %v364_v30, %v1066_v51  ;;  %v381_v4 = vrot.slane %v364_v30, %v1075_v55 }
 0x1f3   :  { %v476_v13 = vsel %vm474_vm5, %v469_v6, %v471_v10  ;;  %v220_v6 = vld [vmem:[#allocation3] ss:$8 sm:$0xf] }
 0x1f4   :  { %506 = vst [vmem:[#allocation2 + $0x58] sm:$0xf] %v502_v9  ;;  %v503_v15 = vmul.f32 %v489_v7, %v476_v13  ;;  %v473_v16 = vpop.permute.xlu0 %472 }
 0x1f5   :  { %v475_v17 = vsel %vm474_vm5, %v471_v10, %v473_v16  ;;  %v478_v18 = vsel %vm474_vm5, %v473_v16, %v467_v2  ;;  %v229_v16 = vrot.slane %v220_v6, %v1069_v53 }
 0x1f6   :  { %507 = vst [vmem:[#allocation2 + $0x10] sm:$0xf] %v503_v15  ;;  %v504_v19 = vmul.f32 %v493_v11, %v475_v17  ;;  %v505_v20 = vmul.f32 %v497_v12, %v478_v18  ;;  %v251_v21 = vpop.permute.xlu1 %250 }
 0x1f8   :  { %508 = vst [vmem:[#allocation2 + $0x98] sm:$0xf] %v504_v19  ;;  %509 = vst [vmem:[#allocation2 + $0x60] sm:$0xf] %v505_v20  ;;  %v253_v23 = vpop.permute.xlu0 %252  ;;  %v233_v20 = vrot.slane %v220_v6, %v1072_v54 }
 0x1f9   :  { %v261_v25 = vsel %vm258_vm6, %v251_v21, %v253_v23 }
 0x1fa   :  { %v287_v26 = vmul.f32 %v273_v22, %v261_v25  ;;  %v255_v27 = vpop.permute.xlu1 %254  ;;  %v237_v25 = vrot.slane %v220_v6, %v1075_v55 }
 0x1fb   :  { %v260_v31 = vsel %vm258_vm6, %v253_v23, %v255_v27  ;;  %v623_v35 = vld [vmem:[#allocation2 + $0x58] sm:$0xff] }
 0x1fc   :  { %v295_v32 = vrot.slane %v287_v26, 4  ;;  %v288_v33 = vmul.f32 %v277_v24, %v260_v31  ;;  %v257_v34 = vpop.permute.xlu0 %256  ;;  %v635_v48 = vpack.c.bf16 %v623_v35, %v619_v46  ;;  %v225_v24 = vrot.slane %v220_v6, %v1066_v51 }
 0x1fd   :  { %v259_v36 = vsel %vm258_vm6, %v255_v27, %v257_v34  ;;  %v262_v37 = vsel %vm258_vm6, %v257_v34, %v251_v21  ;;  %v624_v40 = vld [vmem:[#allocation2 + $0x10] sm:$0xff] }
 0x1fe   :  { %303 = vst [vmem:[#allocation2 + $0x38] sm:$0xf0] %v295_v32  ;;  %v296_v41 = vrot.slane %v288_v33, 4  ;;  %v286_v42 = vmul.f32 %v269_v28, %v262_v37  ;;  %v289_v43 = vmul.f32 %v281_v29, %v259_v36  ;;  %v351_v44 = vpop.permute.xlu1 %350  ;;  %v636_v45 = vpack.c.bf16 %v624_v40, %v620_v39  ;;  %v320_v27 = vld [vmem:[#allocation3 + $0x2] ss:$8 sm:$0xf] }
 0x1ff   :  { %v626_v49 = vld [vmem:[#allocation2 + $0x60] sm:$0xff]  ;;  %v625_v57 = vld [vmem:[#allocation2 + $0x98] sm:$0xff]  ;;  %v329_v35 = vrot.slane %v320_v27, %v1069_v53  ;;  %v333_v37 = vrot.slane %v320_v27, %v1072_v54 }
 0x200   :  { %304 = vst [vmem:[#allocation2 + $0x50] sm:$0xf0] %v296_v41  ;;  %v294_v58 = vrot.slane %v286_v42, 4  ;;  %v297_v59 = vrot.slane %v289_v43, 4  ;;  %v353_v60 = vpop.permute.xlu0 %352  ;;  %677 = vmatprep.subr.bf16.mxu0 %v636_v45  ;;  %v638_v61 = vpack.c.bf16 %v626_v49, %v622_v47  ;;  %v637_v62 = vpack.c.bf16 %v625_v57, %v621_v56 }
 0x201   :  { %v361_v63 = vsel %vm358_vm7, %v351_v44, %v353_v60  ;;  %678 = vmatpush1.bf16.msra.mxu0 %v635_v48  ;;  %v325_v41 = vrot.slane %v320_v27, %v1066_v51  ;;  %v337_v42 = vrot.slane %v320_v27, %v1075_v55 }
 0x202   :  { %302 = vst [vmem:[#allocation2] sm:$0xf0] %v294_v58  ;;  %305 = vst [vmem:[#allocation2 + $0x18] sm:$0xf0] %v297_v59  ;;  %v387_v1 = vmul.f32 %v373_v38, %v361_v63  ;;  %718 = vmatprep.subr.bf16.mxu1 %v638_v61  ;;  %v355_v2 = vpop.permute.xlu1 %354 }
 0x203   :  { %v360_v5 = vsel %vm358_vm7, %v353_v60, %v355_v2  ;;  %719 = vmatpush1.bf16.msra.mxu1 %v637_v62 }
 0x204   :  { %v395_v7 = vrot.slane %v387_v1, 4  ;;  %v388_v8 = vmul.f32 %v377_v52, %v360_v5  ;;  %v357_v9 = vpop.permute.xlu0 %356 }
 0x205   :  { %v359_v10 = vsel %vm358_vm7, %v355_v2, %v357_v9  ;;  %v362_v11 = vsel %vm358_vm7, %v357_v9, %v351_v44 }
 0x206   :  { %403 = vst [vmem:[#allocation2 + $0x68] sm:$0xf0] %v395_v7  ;;  %v396_v12 = vrot.slane %v388_v8, 4  ;;  %v386_v13 = vmul.f32 %v369_v3, %v362_v11  ;;  %v389_v14 = vmul.f32 %v381_v4, %v359_v10  ;;  %v206_v15 = vpop.permute.xlu1 %205 }
 0x208   :  { %404 = vst [vmem:[#allocation2 + $0x78] sm:$0xf0] %v396_v12  ;;  %v394_v17 = vrot.slane %v386_v13, 4  ;;  %v397_v18 = vrot.slane %v389_v14, 4  ;;  %v208_v19 = vpop.permute.xlu0 %207 }
 0x209   :  { %v218_v21 = vsel %vm215_vm8, %v206_v15, %v208_v19 }
 0x20a   :  { %402 = vst [vmem:[#allocation2 + $0x30] sm:$0xf0] %v394_v17  ;;  %405 = vst [vmem:[#allocation2 + $0x80] sm:$0xf0] %v397_v18  ;;  %v243_v22 = vmul.f32 %v229_v16, %v218_v21  ;;  %v210_v23 = vpop.permute.xlu1 %209 }
 0x20b   :  { %v217_v26 = vsel %vm215_vm8, %v208_v19, %v210_v23 }
 0x20c   :  { %247 = vst [vmem:[#allocation2 + $0x38] sm:$0xf] %v243_v22  ;;  %v244_v28 = vmul.f32 %v233_v20, %v217_v26  ;;  %v212_v29 = vpop.permute.xlu0 %211  ;;  %v751_v22 = vld [vmem:[%s1202_s8] sm:$0xf]  ;;  %s926_s8 = scalar_lea.vmem %s870_s20, 512 }
 0x20d   :  { %v216_v30 = vsel %vm215_vm8, %v210_v23, %v212_v29  ;;  %v219_v31 = vsel %vm215_vm8, %v212_v29, %v206_v15  ;;  %p927_p5 = scmp.ne.s32.totalorder %s870_s20, %s926_s8  ;;  %p932_p7 = scmp.lt.s32.totalorder %s926_s8, %s926_s8 }
 0x20e   :  { %248 = vst [vmem:[#allocation2 + $0x50] sm:$0xf] %v244_v28  ;;  %v242_v32 = vmul.f32 %v225_v24, %v219_v31  ;;  %v245_v33 = vmul.f32 %v237_v25, %v216_v30  ;;  %v307_v34 = vpop.permute.xlu1 %306 }
 0x20f   :  { %p933_p8 = por %p932_p7, %p931_p6 }
 0x210   :  { %246 = vst [vmem:[#allocation2] sm:$0xf] %v242_v32  ;;  %249 = vst [vmem:[#allocation2 + $0x18] sm:$0xf] %v245_v33  ;;  %v309_v36 = vpop.permute.xlu0 %308 }
 0x211   :  { %v317_v38 = vsel %vm314_vm9, %v307_v34, %v309_v36  ;;  %p934_p9 = pnand %p933_p8, %p927_p5 }
 0x212   :  { %v343_v39 = vmul.f32 %v329_v35, %v317_v38  ;;  %v311_v40 = vpop.permute.xlu1 %310 }
 0x213   :  { %v316_v43 = vsel %vm314_vm9, %v309_v36, %v311_v40  ;;  %v612_v51 = vld [vmem:[#allocation2 + $0x38] sm:$0xff] }
 0x214   :  { %347 = vst [vmem:[#allocation2 + $0x68] sm:$0xf] %v343_v39  ;;  %v344_v44 = vmul.f32 %v333_v37, %v316_v43  ;;  %v313_v53 = vpop.permute.xlu0 %312 }
 0x215   :  { %v315_v45 = vsel %vm314_vm9, %v311_v40, %v313_v53  ;;  %v318_v54 = vsel %vm314_vm9, %v313_v53, %v307_v34  ;;  %v613_v61 = vld [vmem:[#allocation2 + $0x50] sm:$0xff] }
 0x216   :  { %348 = vst [vmem:[#allocation2 + $0x78] sm:$0xf] %v344_v44  ;;  %v342_v46 = vmul.f32 %v325_v41, %v318_v54  ;;  %v345_v47 = vmul.f32 %v337_v42, %v315_v45 }
 0x217   :  { %v611_v49 = vld [vmem:[#allocation2] sm:$0xff]  ;;  %v614_v57 = vld [vmem:[#allocation2 + $0x18] sm:$0xff] }
 0x218   :  { %346 = vst [vmem:[#allocation2 + $0x30] sm:$0xf] %v342_v46  ;;  %349 = vst [vmem:[#allocation2 + $0x80] sm:$0xf] %v345_v47 }
 0x21b   :  { %v616_v48 = vld [vmem:[#allocation2 + $0x68] sm:$0xff] }
 0x21c   :  { %v632_v55 = vpack.c.bf16 %v616_v48, %v612_v51 }
 0x21d   :  { %v617_v52 = vld [vmem:[#allocation2 + $0x78] sm:$0xff] }
 0x21e   :  { %679 = vmatprep.subr.bf16.mxu0 %v632_v55  ;;  %v633_v62 = vpack.c.bf16 %v617_v52, %v613_v61 }
 0x21f   :  { %v615_v56 = vld [vmem:[#allocation2 + $0x30] sm:$0xff]  ;;  %v618_v58 = vld [vmem:[#allocation2 + $0x80] sm:$0xff]  ;;  %v647_v63 = vpop.permute.xlu1 %646 }
 0x220   :  { %v631_v59 = vpack.c.bf16 %v615_v56, %v611_v49  ;;  %v634_v60 = vpack.c.bf16 %v618_v58, %v614_v57 }
 0x221   :  { %v760_v23 = vpop.permute.xlu0 %759 }
 0x222   :  { %680 = vmatpush1.bf16.msra.mxu0 %v631_v59  ;;  %720 = vmatprep.subr.bf16.mxu1 %v634_v60 }
 0x223   :  { %721 = vmatpush1.bf16.msra.mxu1 %v633_v62 }
 0x225   :  { %883 = vmatmul.mubr.msk.bf16.vlgmr.msra.gmra.mxu0 %vm649_vm10, %v610_v50 }
 0x226   :  { %885 = vmatmul.mubr.msk.bf16.vlgmr.msra.gmra.mxu1 %vm649_vm10, %v610_v50  ;;  %809 = vmatprep.mubr.bf16.mxu0 %v953_v0 }
 0x227   :  { %850 = vmatprep.mubr.bf16.mxu1 %v953_v0 }
 0x2e5   :  { %v699_v1 = vpop.f32.mrf.mxu0 }
 0x2e6   :  { %v700_v2 = vadd.f32 %v699_v1, %v647_v63  ;;  %v740_v3 = vpop.f32.mrf.mxu1 }
 0x2e7   :  { %v741_v4 = vadd.f32 %v740_v3, %v647_v63  ;;  %v701_v5 = vpop.f32.mrf.mxu0 }
 0x2e8   :  { %v747_v6 = vmax.f32 %v700_v2, 0.0  ;;  %v702_v7 = vadd.f32 %v701_v5, %v647_v63  ;;  %v742_v8 = vpop.f32.mrf.mxu1 }
 0x2e9   :  { %v749_v9 = vmax.f32 %v741_v4, 0.0  ;;  %v743_v10 = vadd.f32 %v742_v8, %v647_v63  ;;  %v703_v11 = vpop.f32.mrf.mxu0 }
 0x2ea   :  { %v752_v12 = vpack.c.bf16 %v747_v6, %v747_v6  ;;  %v748_v13 = vmax.f32 %v702_v7, 0.0  ;;  %v744_v14 = vpop.f32.mrf.mxu1 }
 0x2eb   :  { %v754_v15 = vpack.c.bf16 %v749_v9, %v749_v9  ;;  %v750_v16 = vmax.f32 %v743_v10, 0.0  ;;  %v704_v17 = vpop.f32.mrf.mxu0 }
 0x2ec   :  { %v753_v18 = vpack.c.bf16 %v748_v13, %v748_v13  ;;  %v745_v0 = vpop.f32.mrf.mxu1  ;;  %v766_v20 = vsel %vm106_vm0, %v752_v12, 0 }
 0x2ed   :  { %v755_v19 = vpack.c.bf16 %v750_v16, %v750_v16  ;;  %v772_v21 = vsel %vm106_vm0, %v754_v15, 0 }
 0x2ee   :  { %886 = vmatprep.subr.msk.bf16.mxu0 %vm106_vm0, %v753_v18 }
 0x2ef   :  { %792 = vmatpush1.bf16.msra.mxu0 %v766_v20  ;;  %888 = vmatprep.subr.msk.bf16.mxu1 %vm106_vm0, %v755_v19 }
 0x2f0   :  { %833 = vmatpush1.bf16.msra.mxu1 %v772_v21 }
 0x2f2   :  { %887 = vmatmul.mubr.msk.bf16.vlgmr.msra.gmra.mxu0 %vm102_vm1, %v751_v22 }
 0x2f3   :  { %889 = vmatmul.mubr.msk.bf16.vlgmr.msra.gmra.mxu1 %vm102_vm1, %v751_v22 }
 0x3b2   :  { %v811_v24 = vpop.f32.mrf.mxu0 }
 0x3b3   :  { %v812_v25 = vadd.f32 %v811_v24, %v760_v23  ;;  %v852_v26 = vpop.f32.mrf.mxu1 }
 0x3b4   :  { %v853_v27 = vadd.f32 %v852_v26, %v760_v23  ;;  %v813_v28 = vpop.f32.mrf.mxu0 }
 0x3b5   :  { %859 = vst [vmem:[#allocation6] sm:$0xff] %v812_v25  ;;  %v814_v29 = vadd.f32 %v813_v28, %v760_v23  ;;  %v854_v30 = vpop.f32.mrf.mxu1 }
 0x3b6   :  { %861 = vst [vmem:[#allocation6 + $0x10] sm:$0xff] %v853_v27  ;;  %v855_v31 = vadd.f32 %v854_v30, %v760_v23  ;;  %v815_v32 = vpop.f32.mrf.mxu0 }
 0x3b7   :  { %860 = vst [vmem:[#allocation6 + $0x8] sm:$0xff] %v814_v29  ;;  %v856_v33 = vpop.f32.mrf.mxu1 }
 0x3b8   :  { %862 = vst [vmem:[#allocation6 + $0x18] sm:$0xff] %v855_v31  ;;  %v816_v34 = vpop.f32.mrf.mxu0 }
 0x3b9   :  { %v857_v35 = vpop.f32.mrf.mxu1 }
 0x3ba   :  { %937 = shalt.err (!%p934_p9)
}
 0x3bb   :  { %872 = dma.vmem_to_hbm [thread:$0]  %s870_s20, 512, %s1204_s10, [#allocation5]  }
 0x3bc   :  { %948 = dma.done.wait [#allocation5], 512  }
 0x3bd   :  { %949 = vsyncadd [#allocation5], 4294966784 }
 0x3be   :  { %876 = vsyncpa [#allocation4], 1 }
 0x3bf   :  { %877 = vsyncpa [#allocation5], 1 }

</bundles_post_ra>
